<compile_context>
chip_gen: v6e
topology: v6e:2x2x1
jax: 0.10.0
libtpu: 0.0.40
codegen_flags: <defaults>
</compile_context>

<pallas_src>
import functools

import jax
import jax.numpy as jnp
from jax import lax
from jax.experimental import pallas as pl
from jax.experimental.pallas import tpu as pltpu


def _round_up(a: int, b: int) -> int:
    return (a + b - 1) // b * b


def _pick_row_tile(n: int) -> int:
    # >=2 tiles for N>=256 (keeps both v7x TensorCores busy), 512-row tiles for
    # big N (v6e/v5e HBM-roofline sweet spot), 8-aligned single tile otherwise.
    if n >= 1024:
        return 512
    if n >= 512:
        return 256
    if n >= 128:
        return 128
    return _round_up(max(n, 1), 8)


def _pick_k_tile(m: int) -> int:
    if m <= 2048:
        return m
    for kt in (2048, 1024, 512, 256, 128):
        if m % kt == 0:
            return kt
    # Uncommon M that no power-of-two tile divides: fall back to a single K
    # step (weight fully resident). Fine on v5e/v6e; may exceed v7x VMEM for
    # very large, oddly-sized M.
    return m


def _proj_ln_kernel(x_ref, w_ref, bias_pos_ref, gamma_ref, beta_ref,
                    o_ref, acc_ref, *, l_actual):
    # x_ref:        (Rt, Kt)  f32 flattened patch rows (cast to bf16 in-kernel)
    # w_ref:        (Kt, Lp)  bf16 projection weight slice (lane-padded)
    # bias_pos_ref: (1, Lp)   f32 (bias + positional encoding), pre-folded
    # gamma/beta:   (1, Lp)   f32 LayerNorm affine (zero-padded past l_actual)
    # o_ref:        (Rt, Lp)  output tile
    # acc_ref:      (Rt, Lp)  f32 accumulator scratch (resident across K)
    k = pl.program_id(1)

    @pl.when(k == 0)
    def _():
        acc_ref[...] = jnp.zeros_like(acc_ref)

    # In-kernel f32 -> bf16 cast of the x tile (x stays f32 in HBM).
    acc_ref[...] += jnp.dot(x_ref[...].astype(w_ref.dtype), w_ref[...],
                            preferred_element_type=jnp.float32)

    @pl.when(k == pl.num_programs(1) - 1)
    def _():
        y = acc_ref[...] + bias_pos_ref[...]            # fused bias + pos add
        inv_l = 1.0 / float(l_actual)
        mean = jnp.sum(y, axis=-1, keepdims=True) * inv_l
        # Pad lanes of y are exactly zero (zero weight columns, zero-padded
        # bias/pos), so E[y^2] - mean^2 needs no lane mask.
        var = jnp.sum(y * y, axis=-1, keepdims=True) * inv_l - mean * mean
        normed = (y - mean) * lax.rsqrt(var + 1e-5)
        # gamma/beta pads are zero -> padded output lanes come out as 0.
        o_ref[...] = (normed * gamma_ref[...] + beta_ref[...]).astype(o_ref.dtype)


def prepare_params(w, b, cls_tok, pos, gamma, beta, *,
                   matmul_dtype=jnp.bfloat16):
    """One-time parameter preprocessing (pad/cast + folded adds + cls-row LN).

    Call once at model init; parameters are static, so this is hoisted out of
    the per-forward path.
    """
    M, L = w.shape
    Lp = _round_up(L, 128)

    def lane_pad(v):
        v = jnp.asarray(v, jnp.float32).reshape(1, L)
        return jnp.pad(v, ((0, 0), (0, Lp - L)))

    pos_p = lane_pad(pos)
    params = {
        "w": jnp.pad(w, ((0, 0), (0, Lp - L))).astype(matmul_dtype),
        "bias_pos": lane_pad(b) + pos_p,          # folded bias + pos
        "gamma": lane_pad(gamma),
        "beta": lane_pad(beta),
        "M": M, "L": L, "Lp": Lp,
    }

    # The class-token row is batch-invariant: fold cls + pos and LayerNorm it
    # once here in plain JAX (a dedicated pallas_call for one row was pure
    # launch overhead).
    cls_y = (jnp.asarray(cls_tok, jnp.float32).reshape(1, L)
             + jnp.asarray(pos, jnp.float32).reshape(1, L))
    mean = jnp.mean(cls_y, axis=-1, keepdims=True)
    var = jnp.mean((cls_y - mean) ** 2, axis=-1, keepdims=True)
    params["cls_row"] = ((cls_y - mean) * lax.rsqrt(var + 1e-5)
                         * jnp.asarray(gamma, jnp.float32).reshape(1, L)
                         + jnp.asarray(beta, jnp.float32).reshape(1, L))
    return params


def input_embeddings(x, params, *, out_dtype=jnp.float32):
    """x: (B, C, H, W) float32.  Returns (B, C+1, L) in out_dtype."""
    B, C, H, W = x.shape
    M, L, Lp = params["M"], params["L"], params["Lp"]
    assert H * W == M, (H * W, M)
    N = B * C

    row_tile = _pick_row_tile(N)
    n_pad = _round_up(N, row_tile)
    num_row_tiles = n_pad // row_tile

    k_tile = _pick_k_tile(M)
    num_k_tiles = max(M // k_tile, 1)

    # The einops rearrange is a plain row-major flatten of (H, W) -> H*W.
    xf = x.reshape(N, M)
    if n_pad != N:
        xf = jnp.pad(xf, ((0, n_pad - N), (0, 0)))
    # NOTE: x stays f32 in HBM; the bf16 cast happens per-tile in the kernel.

    out_bytes = jnp.dtype(out_dtype).itemsize
    w_bytes = params["w"].dtype.itemsize
    vmem_bytes = (2 * row_tile * k_tile * 4          # x tile (f32), double-buffered
                  + 2 * k_tile * Lp * w_bytes        # weight tile, double-buffered
                  + 2 * row_tile * Lp * out_bytes    # output tile, double-buffered
                  + row_tile * Lp * 4                # f32 accumulator scratch
                  + 8 * Lp * 4)                      # small invariant rows
    vmem_limit = int(min(max(2 * vmem_bytes, 32 << 20), 64 << 20))

    patch_out = pl.pallas_call(
        functools.partial(_proj_ln_kernel, l_actual=L),
        out_shape=jax.ShapeDtypeStruct((n_pad, Lp), out_dtype),
        grid_spec=pltpu.PrefetchScalarGridSpec(
            num_scalar_prefetch=0,
            grid=(num_row_tiles, num_k_tiles),        # reduction (K) axis last
            in_specs=[
                pl.BlockSpec((row_tile, k_tile), lambda i, k: (i, k)),  # x (f32)
                pl.BlockSpec((k_tile, Lp), lambda i, k: (k, 0)),        # weight (bf16)
                pl.BlockSpec((1, Lp), lambda i, k: (0, 0)),             # bias + pos
                pl.BlockSpec((1, Lp), lambda i, k: (0, 0)),             # ln gamma
                pl.BlockSpec((1, Lp), lambda i, k: (0, 0)),             # ln beta
            ],
            out_specs=pl.BlockSpec((row_tile, Lp), lambda i, k: (i, 0)),
            scratch_shapes=[pltpu.VMEM((row_tile, Lp), jnp.float32)],
        ),
        compiler_params=pltpu.CompilerParams(
            # Row-tile axis shards across v7x's 2 TensorCores; K is a reduction.
            dimension_semantics=("parallel", "arbitrary"),
            vmem_limit_bytes=vmem_limit,
        ),
    )(xf, params["w"], params["bias_pos"], params["gamma"], params["beta"])

    # Assemble (B, C+1, L). For production configs this slice+concat could be
    # folded into the kernel (write directly into a (B, C+1, Lp) output); kept
    # as cheap layout glue here since the class row is a single token.
    patch_tokens = patch_out[:N, :L].reshape(B, C, L)
    cls_tokens = jnp.broadcast_to(params["cls_row"].astype(out_dtype)[None],
                                  (B, 1, L))
    return jnp.concatenate([patch_tokens, cls_tokens], axis=1).astype(out_dtype)


def _reference(x, w, b, cls_tok, pos, gamma, beta):
    B, C, H, W = x.shape
    xf = x.reshape(B, C, H * W)
    y = xf @ w + b                                        # (B, C, L)
    cls = jnp.broadcast_to(cls_tok[None], (B, 1, w.shape[-1]))
    tokens = jnp.concatenate([y, cls], axis=1)            # (B, C+1, L)
    tokens = tokens + pos[None]                           # broadcast over tokens
    mean = tokens.mean(-1, keepdims=True)
    var = ((tokens - mean) ** 2).mean(-1, keepdims=True)
    return (tokens - mean) * lax.rsqrt(var + 1e-5) * gamma + beta


if __name__ == "__main__":
    # Small, module-consistent shapes: batch=2, channels=4, 16x16 spatial,
    # latent=32 (patch_size only affects the - no-op - rearrange).
    B, C, H, W = 2, 4, 16, 16
    latent = 32
    M = H * W

    key = jax.random.PRNGKey(0)
    kx, kw, kb, kc, kp = jax.random.split(key, 5)

    x = jax.random.normal(kx, (B, C, H, W), dtype=jnp.float32)
    # Module creates Linear inside forward; weights fixed deterministically here.
    w = jax.random.normal(kw, (M, latent), dtype=jnp.float32) * 0.02   # Linear.weight.T
    b = jax.random.normal(kb, (1, latent), dtype=jnp.float32) * 0.02   # Linear.bias
    cls_tok = jax.random.normal(kc, (1, latent), dtype=jnp.float32)    # Parameter randn(1,1,L)
    pos = jax.random.uniform(kp, (1, latent), dtype=jnp.float32)       # Parameter rand(1,1,L)
    gamma = jnp.ones((1, latent), dtype=jnp.float32)                   # LayerNorm defaults
    beta = jnp.zeros((1, latent), dtype=jnp.float32)

    params = prepare_params(w, b, cls_tok, pos, gamma, beta)           # one-time
    out = input_embeddings(x, params)
    out = jax.block_until_ready(out)

    ref = _reference(x, w, b, cls_tok, pos, gamma, beta)
    assert out.shape == (B, C + 1, latent), out.shape
    # Matmul RHS (and the in-kernel LHS cast) are bf16 with f32 MXU
    # accumulation, so compare at a correspondingly looser tolerance.
    max_err = float(jnp.max(jnp.abs(out - ref)))
    assert jnp.allclose(out, ref, atol=2e-2, rtol=2e-2), max_err

    print("KERNEL_OK")
</pallas_src>

<mosaic_0001>
module attributes {stable_mosaic.version = 11 : i64} {
  func.func @_proj_ln_kernel(%arg0: i32, %arg1: i32, %arg2: memref<8x256xf32, #tpu.memory_space<vmem>>, %arg3: memref<256x128xbf16, #tpu.memory_space<vmem>>, %arg4: memref<1x128xf32, #tpu.memory_space<vmem>>, %arg5: memref<1x128xf32, #tpu.memory_space<vmem>>, %arg6: memref<1x128xf32, #tpu.memory_space<vmem>>, %arg7: memref<8x128xf32, #tpu.memory_space<vmem>>, %arg8: memref<8x128xf32, #tpu.memory_space<vmem>>) attributes {dimension_semantics = [#tpu.dimension_semantics<parallel>, #tpu.dimension_semantics<arbitrary>], iteration_bounds = array<i64: 1, 1>, scalar_prefetch = 0 : i64, scratch_operands = 1 : i64, tpu.core_type = #tpu.core_type<tc>, window_params = [{transform_indices = @transform_0, window_bounds = array<i64: 8, 256>}, {transform_indices = @transform_1, window_bounds = array<i64: 256, 128>}, {pipeline_mode = #tpu.pipeline_mode<synchronous>, transform_indices = @transform_2, window_bounds = array<i64: 1, 128>}, {pipeline_mode = #tpu.pipeline_mode<synchronous>, transform_indices = @transform_3, window_bounds = array<i64: 1, 128>}, {pipeline_mode = #tpu.pipeline_mode<synchronous>, transform_indices = @transform_4, window_bounds = array<i64: 1, 128>}, {transform_indices = @transform_5, window_bounds = array<i64: 8, 128>}]} {
    %c0_i32 = arith.constant 0 : i32
    %0 = arith.cmpi eq, %arg1, %c0_i32 : i32
    %1 = arith.extui %0 : i1 to i32
    %c0_i32_0 = arith.constant 0 : i32
    %2 = arith.cmpi ne, %1, %c0_i32_0 : i32
    scf.if %2 {
      %cst_10 = arith.constant 0.000000e+00 : f32
      %13 = vector.broadcast %cst_10 : f32 to vector<8x128xf32>
      %c0_11 = arith.constant 0 : index
      %c0_12 = arith.constant 0 : index
      %14 = vector.load %arg8[%c0_11, %c0_12] : memref<8x128xf32, #tpu.memory_space<vmem>>, vector<8x128xf32>
      tpu.vector_store %arg8[%c0_11, %c0_12], %13 {strides = array<i32>} : memref<8x128xf32, #tpu.memory_space<vmem>>, vector<8x128xf32>,
    } else {
    }
    %c0 = arith.constant 0 : index
    %c0_1 = arith.constant 0 : index
    %3 = vector.load %arg8[%c0, %c0_1] : memref<8x128xf32, #tpu.memory_space<vmem>>, vector<8x128xf32>
    %c0_2 = arith.constant 0 : index
    %c0_3 = arith.constant 0 : index
    %4 = vector.load %arg2[%c0_2, %c0_3] : memref<8x256xf32, #tpu.memory_space<vmem>>, vector<8x256xf32>
    %5 = arith.truncf %4 : vector<8x256xf32> to vector<8x256xbf16>
    %c0_4 = arith.constant 0 : index
    %c0_5 = arith.constant 0 : index
    %6 = vector.load %arg3[%c0_4, %c0_5] : memref<256x128xbf16, #tpu.memory_space<vmem>>, vector<256x128xbf16>
    %cst = arith.constant dense<0.000000e+00> : vector<8x128xf32>
    %7 = tpu.matmul %5, %6, %cst {dimension_numbers = #tpu.dot_dimension_numbers<[1], [0], [0], [1], [0, 0, 1, 1], [], []>} : vector<8x256xbf16>, vector<256x128xbf16>, vector<8x128xf32> -> vector<8x128xf32>
    %8 = arith.addf %3, %7 : vector<8x128xf32>
    %c0_6 = arith.constant 0 : index
    %c0_7 = arith.constant 0 : index
    %9 = vector.load %arg8[%c0_6, %c0_7] : memref<8x128xf32, #tpu.memory_space<vmem>>, vector<8x128xf32>
    tpu.vector_store %arg8[%c0_6, %c0_7], %8 {strides = array<i32>} : memref<8x128xf32, #tpu.memory_space<vmem>>, vector<8x128xf32>,
    %c0_i32_8 = arith.constant 0 : i32
    %10 = arith.cmpi eq, %arg1, %c0_i32_8 : i32
    %11 = arith.extui %10 : i1 to i32
    %c0_i32_9 = arith.constant 0 : i32
    %12 = arith.cmpi ne, %11, %c0_i32_9 : i32
    scf.if %12 {
      %c0_10 = arith.constant 0 : index
      %c0_11 = arith.constant 0 : index
      %13 = vector.load %arg8[%c0_10, %c0_11] : memref<8x128xf32, #tpu.memory_space<vmem>>, vector<8x128xf32>
      %c0_12 = arith.constant 0 : index
      %c0_13 = arith.constant 0 : index
      %14 = vector.load %arg4[%c0_12, %c0_13] : memref<1x128xf32, #tpu.memory_space<vmem>>, vector<1x128xf32>
      %15 = vector.broadcast %14 : vector<1x128xf32> to vector<8x128xf32>
      %16 = arith.addf %13, %15 : vector<8x128xf32>
      %cst_14 = arith.constant dense<0.000000e+00> : vector<8xf32>
      %17 = vector.multi_reduction <add>, %16, %cst_14 [1] : vector<8x128xf32> to vector<8xf32>
      %18 = vector.shape_cast %17 : vector<8xf32> to vector<8x1xf32>
      %cst_15 = arith.constant 3.125000e-02 : f32
      %19 = vector.broadcast %cst_15 : f32 to vector<8x1xf32>
      %20 = arith.mulf %18, %19 : vector<8x1xf32>
      %21 = arith.mulf %16, %16 : vector<8x128xf32>
      %cst_16 = arith.constant dense<0.000000e+00> : vector<8xf32>
      %22 = vector.multi_reduction <add>, %21, %cst_16 [1] : vector<8x128xf32> to vector<8xf32>
      %23 = vector.shape_cast %22 : vector<8xf32> to vector<8x1xf32>
      %cst_17 = arith.constant 3.125000e-02 : f32
      %24 = vector.broadcast %cst_17 : f32 to vector<8x1xf32>
      %25 = arith.mulf %23, %24 : vector<8x1xf32>
      %26 = arith.mulf %20, %20 : vector<8x1xf32>
      %27 = arith.subf %25, %26 : vector<8x1xf32>
      %28 = vector.broadcast %20 : vector<8x1xf32> to vector<8x128xf32>
      %29 = arith.subf %16, %28 : vector<8x128xf32>
      %cst_18 = arith.constant 9.99999974E-6 : f32
      %30 = vector.broadcast %cst_18 : f32 to vector<8x1xf32>
      %31 = arith.addf %27, %30 : vector<8x1xf32>
      %32 = math.rsqrt %31 : vector<8x1xf32>
      %33 = vector.broadcast %32 : vector<8x1xf32> to vector<8x128xf32>
      %34 = arith.mulf %29, %33 : vector<8x128xf32>
      %c0_19 = arith.constant 0 : index
      %c0_20 = arith.constant 0 : index
      %35 = vector.load %arg5[%c0_19, %c0_20] : memref<1x128xf32, #tpu.memory_space<vmem>>, vector<1x128xf32>
      %36 = vector.broadcast %35 : vector<1x128xf32> to vector<8x128xf32>
      %37 = arith.mulf %34, %36 : vector<8x128xf32>
      %c0_21 = arith.constant 0 : index
      %c0_22 = arith.constant 0 : index
      %38 = vector.load %arg6[%c0_21, %c0_22] : memref<1x128xf32, #tpu.memory_space<vmem>>, vector<1x128xf32>
      %39 = vector.broadcast %38 : vector<1x128xf32> to vector<8x128xf32>
      %40 = arith.addf %37, %39 : vector<8x128xf32>
      %c0_23 = arith.constant 0 : index
      %c0_24 = arith.constant 0 : index
      %41 = vector.load %arg7[%c0_23, %c0_24] : memref<8x128xf32, #tpu.memory_space<vmem>>, vector<8x128xf32>
      tpu.vector_store %arg7[%c0_23, %c0_24], %40 {strides = array<i32>} : memref<8x128xf32, #tpu.memory_space<vmem>>, vector<8x128xf32>,
    } else {
    }
    return
  }
  func.func @transform_0(%arg0: i32, %arg1: i32) -> (i32, i32) {
    %c0_i32 = arith.constant 0 : i32
    return %arg0, %arg1 : i32, i32
  }
  func.func @transform_1(%arg0: i32, %arg1: i32) -> (i32, i32) {
    %c0_i32 = arith.constant 0 : i32
    %c0_i32_0 = arith.constant 0 : i32
    return %arg1, %c0_i32 : i32, i32
  }
  func.func @transform_2(%arg0: i32, %arg1: i32) -> (i32, i32) {
    %c0_i32 = arith.constant 0 : i32
    %c0_i32_0 = arith.constant 0 : i32
    %c0_i32_1 = arith.constant 0 : i32
    return %c0_i32, %c0_i32_0 : i32, i32
  }
  func.func @transform_3(%arg0: i32, %arg1: i32) -> (i32, i32) {
    %c0_i32 = arith.constant 0 : i32
    %c0_i32_0 = arith.constant 0 : i32
    %c0_i32_1 = arith.constant 0 : i32
    return %c0_i32, %c0_i32_0 : i32, i32
  }
  func.func @transform_4(%arg0: i32, %arg1: i32) -> (i32, i32) {
    %c0_i32 = arith.constant 0 : i32
    %c0_i32_0 = arith.constant 0 : i32
    %c0_i32_1 = arith.constant 0 : i32
    return %c0_i32, %c0_i32_0 : i32, i32
  }
  func.func @transform_5(%arg0: i32, %arg1: i32) -> (i32, i32) {
    %c0_i32 = arith.constant 0 : i32
    %c0_i32_0 = arith.constant 0 : i32
    return %arg0, %c0_i32 : i32, i32
  }
}

</mosaic_0001>

<bundles_post_ra>
// kernel: tpu_custom_call.1
= control target key start
LH: loop header
LB: loop body
LE: loop exit
PB: predicated region body
PF: predicated region fallthrough
CT: control target
= control target key end

     0   :  { %10 = vsyncpa [#allocation4], 0  ;;  %s469_s0 = inlined_call_operand.hbm [shape: f32[8,256], index: 0, kind: input, shape index: {}]   ;;  %s470_s1 = inlined_call_operand.hbm [shape: bf16[256,128], index: 1, kind: input, shape index: {}]   ;;  %s471_s2 = inlined_call_operand.vmem [shape: f32[1,128], index: 2, kind: input, shape index: {}]   ;;  %s472_s3 = inlined_call_operand.vmem [shape: f32[1,128], index: 3, kind: input, shape index: {}]   ;;  %s473_s4 = inlined_call_operand.vmem [shape: f32[1,128], index: 4, kind: input, shape index: {}]   ;;  %s474_s5 = inlined_call_operand.hbm [shape: f32[8,128], index: 5, kind: output, shape index: {}]  }
   0x1   :  { %11 = vsyncpa [#allocation7], 0 }
   0x2   :  { %12 = vsyncpa [#allocation5], 0  ;;  %s416_s18 = smov [#allocation3]   ;;  %s417_s20 = smov [#allocation6]  }
   0x3   :  { %s19_s19 = sshll.u32 %s416_s18, 4  ;;  %s28_s21 = sshll.u32 %s417_s20, 4  ;;  %s20_s19 = int_to_ptr.vmem [resolvable:$true] %s19_s19  ;;  %s29_s21 = int_to_ptr.vmem [resolvable:$true] %s28_s21 }
   0x4   :  { %s358_s22 = scalar_lea.vmem %s20_s19, 256  ;;  %p363_p1 = scmp.lt.s32.totalorder %s20_s19, %s20_s19 }
   0x5   :  { %p359_p0 = scmp.ne.s32.totalorder %s20_s19, %s358_s22  ;;  %p364_p2 = scmp.lt.s32.totalorder %s358_s22, %s358_s22 }
   0x7   :  { %p365_p3 = por %p364_p2, %p363_p1 }
   0x9   :  { %p366_p4 = pnand %p365_p3, %p359_p0 }
   0xb   :  { %369 = shalt.err (!%p366_p4)
}
   0xc   :  { %22 = dma.hbm_to_vmem [thread:$0]  %s469_s0, 256, %s20_s19, [#allocation4]  }
   0xd   :  { %s378_s25 = scalar_lea.vmem %s29_s21, 2048  ;;  %p383_p6 = scmp.lt.s32.totalorder %s29_s21, %s29_s21 }
   0xe   :  { %p379_p5 = scmp.ne.s32.totalorder %s29_s21, %s378_s25  ;;  %p384_p7 = scmp.lt.s32.totalorder %s378_s25, %s378_s25 }
  0x10   :  { %p385_p8 = por %p384_p7, %p383_p6 }
  0x12   :  { %p386_p9 = pnand %p385_p8, %p379_p5 }
  0x14   :  { %389 = shalt.err (!%p386_p9)
}
  0x15   :  { %s418_s26 = smov 64   ;;  %s419_s27 = smov 4  }
  0x16   :  { %34 = dma.hbm_to_vmem [thread:$0]  %s470_s1, 2048, %s29_s21, [#allocation7], %s418_s26, %s418_s26, %s419_s27  }
  0x17   :  { %410 = dma.done.wait [#allocation4], 256  }
  0x18   :  { %411 = vsyncadd [#allocation4], 4294967040 }
  0x19   :  { %412 = dma.done.wait [#allocation7], 2048  }
  0x1a   :  { %413 = vsyncadd [#allocation7], 4294965248  ;;  %v332_v0 = vld [vmem:[#allocation6 + $0x78] sm:$0xff]   ;;  %v334_v2 = vld [vmem:[#allocation6 + $0x70] sm:$0xff]   ;;  %s420_s8 = smov [#allocation8]  }
  0x1b   :  { %v333_v1 = vld [vmem:[#allocation6 + $0x38] sm:$0xff]   ;;  %305 = vmatprep.subr.bf16.mxu0 %v332_v0  ;;  %v335_v3 = vld [vmem:[#allocation6 + $0x30] sm:$0xff]   ;;  %v336_v4 = vld [vmem:[#allocation6 + $0x68] sm:$0xff]   ;;  %s276_s9 = sshll.u32 %s420_s8, 4  ;;  %s277_s9 = int_to_ptr.vmem [resolvable:$true] %s276_s9 }
  0x1c   :  { %306 = vmatpush3.bf16.msra.mxu0 %v333_v1  ;;  %v337_v5 = vld [vmem:[#allocation6 + $0x28] sm:$0xff]   ;;  %v338_v6 = vld [vmem:[#allocation6 + $0x60] sm:$0xff]   ;;  %v340_v8 = vld [vmem:[#allocation6 + $0x58] sm:$0xff]   ;;  %s390_s10 = scalar_lea.vmem %s277_s9, 128  ;;  %p395_p11 = scmp.lt.s32.totalorder %s277_s9, %s277_s9 }
  0x1d   :  { %307 = vmatprep.subr.bf16.mxu0 %v334_v2  ;;  %v339_v7 = vld [vmem:[#allocation6 + $0x20] sm:$0xff]   ;;  %v341_v9 = vld [vmem:[#allocation6 + $0x18] sm:$0xff]   ;;  %v342_v10 = vld [vmem:[#allocation6 + $0x50] sm:$0xff]   ;;  %p391_p10 = scmp.ne.s32.totalorder %s277_s9, %s390_s10  ;;  %p396_p12 = scmp.lt.s32.totalorder %s390_s10, %s390_s10 }
  0x1e   :  { %v55_v11 = vld [vmem:[#allocation3 + $0x8] sm:$0xff]  ;;  %v343_v13 = vld [vmem:[#allocation6 + $0x10] sm:$0xff]   ;;  %v344_v14 = vld [vmem:[#allocation6 + $0x48] sm:$0xff]  }
  0x1f   :  { %v57_v12 = vpack.c.bf16 %v55_v11, %v55_v11  ;;  %v345_v15 = vld [vmem:[#allocation6 + $0x8] sm:$0xff]   ;;  %v346_v16 = vld [vmem:[#allocation6 + $0x40] sm:$0xff]   ;;  %v54_v18 = vld [vmem:[#allocation3] sm:$0xff]  ;;  %p397_p13 = por %p396_p12, %p395_p11 }
  0x20   :  { %308 = vmatpush3.bf16.msra.mxu0 %v335_v3  ;;  %v347_v17 = vld [vmem:[#allocation6] sm:$0xff]   ;;  %v56_v19 = vpack.c.bf16 %v54_v18, %v54_v18  ;;  %v302_v22 = vld [vmem:[%s471_s2] ss:$0 sm:$0xff] }
  0x21   :  { %309 = vmatprep.subr.bf16.mxu0 %v336_v4  ;;  %218 = vmatprep.mubr.bf16.mxu0 %v57_v12  ;;  %v303_v37 = vld [vmem:[%s472_s3] ss:$0 sm:$0xff]  ;;  %p398_p0 = pnand %p397_p13, %p391_p10 }
  0x22   :  { %v304_v39 = vld [vmem:[%s473_s4] ss:$0 sm:$0xff] }
  0x24   :  { %310 = vmatpush3.bf16.msra.mxu0 %v337_v5 }
  0x25   :  { %311 = vmatprep.subr.bf16.mxu0 %v338_v6 }
  0x28   :  { %312 = vmatpush3.bf16.msra.mxu0 %v339_v7 }
  0x29   :  { %313 = vmatprep.subr.bf16.mxu0 %v340_v8 }
  0x2c   :  { %314 = vmatpush3.bf16.msra.mxu0 %v341_v9 }
  0x2d   :  { %315 = vmatprep.subr.bf16.mxu0 %v342_v10 }
  0x30   :  { %316 = vmatpush3.bf16.msra.mxu0 %v343_v13 }
  0x31   :  { %317 = vmatprep.subr.bf16.mxu0 %v344_v14 }
  0x34   :  { %318 = vmatpush3.bf16.msra.mxu0 %v345_v15 }
  0x35   :  { %319 = vmatprep.subr.bf16.mxu0 %v346_v16 }
  0x38   :  { %320 = vmatpush3.bf16.msra.mxu0 %v347_v17 }
  0x3b   :  { %219 = vmatmul.mubr.bf16.vlgmr.msra.gmra.mxu0 %v56_v19 }
  0xfb   :  { %v321_v20 = vpop.f32.mrf.mxu0 }
  0xfd   :  { %v322_v21 = vpop.f32.mrf.mxu0 }
  0xfe   :  { %v323_v23 = vadd.f32 %v322_v21, %v321_v20 }
  0xff   :  { %v324_v24 = vpop.f32.mrf.mxu0 }
 0x100   :  { %v239_v25 = vadd.f32 %v323_v23, %v302_v22 }
 0x101   :  { %v325_v26 = vpop.f32.mrf.mxu0 }
 0x102   :  { %240 = vadd.xlane.f32.xlu0 %v239_v25  ;;  %v243_v27 = vmul.f32 %v239_v25, %v239_v25 }
 0x106   :  { %244 = vadd.xlane.f32.xlu0 %v243_v27 }
 0x18b   :  { %v241_v28 = vpop.xlane.xlu0 %240 }
 0x18c   :  { %v242_v29 = vmul.f32 0.03125, %v241_v28 }
 0x18e   :  { %v247_v31 = vmul.f32 %v242_v29, %v242_v29  ;;  %v249_v35 = vsub.f32 %v239_v25, %v242_v29 }
 0x18f   :  { %v245_v30 = vpop.xlane.xlu0 %244 }
 0x190   :  { %v246_v32 = vmul.f32 0.03125, %v245_v30 }
 0x192   :  { %v248_v33 = vsub.f32 %v246_v32, %v247_v31 }
 0x194   :  { %v250_v34 = vadd.f32 1e-05, %v248_v33 }
 0x196   :  { %348 = vrsqrt.f32 %v250_v34 }
 0x1a3   :  { %v349_v36 = vpop.eup %348 }
 0x1a4   :  { %v252_v38 = vmul.f32 %v349_v36, %v249_v35 }
 0x1a6   :  { %v260_v40 = vmul.f32 %v303_v37, %v252_v38 }
 0x1a8   :  { %v268_v41 = vadd.f32 %v304_v39, %v260_v40 }
 0x1aa   :  { %269 = vst [vmem:[#allocation8] sm:$0xff] %v268_v41 }
 0x1ab   :  { %401 = shalt.err (!%p398_p0)
}
 0x1ac   :  { %279 = dma.vmem_to_hbm [thread:$0]  %s277_s9, 128, %s474_s5, [#allocation5]  }
 0x1ad   :  { %414 = dma.done.wait [#allocation5], 128  }
 0x1ae   :  { %415 = vsyncadd [#allocation5], 4294967168 }
 0x1af   :  { %283 = vsyncpa [#allocation4], 1 }
 0x1b0   :  { %284 = vsyncpa [#allocation7], 1 }
 0x1b1   :  { %285 = vsyncpa [#allocation5], 1 }

</bundles_post_ra>
